<compile_context>
chip_gen: v7x
topology: tpu7x:2x2x1
jax: 0.10.0
libtpu: 0.0.40
codegen_flags: <defaults>
</compile_context>

<pallas_src>
import functools

import numpy as np
import jax
import jax.numpy as jnp
from jax import lax
from jax.experimental import pallas as pl
from jax.experimental.pallas import tpu as pltpu


def _round_up(v, m):
    return ((v + m - 1) // m) * m


def _alpha_h0_kernel(x_ref, xt_ref, dgm_ref, d2_ref, deaths_ref, *, n):
    """H0 persistence (Euclidean MST via Prim) fully in-kernel.

    x_ref      : (1, npad, d)   zero-padded point cloud
    xt_ref     : (1, d, npad)   its transpose (precomputed in the wrapper)
    dgm_ref    : (1, 2, npad)   out: row 0 = births (0), row 1 = deaths
    d2_ref     : (npad, npad)   VMEM scratch: squared distances (+inf on padding)
    deaths_ref : (1, npad)      VMEM scratch: squared MST edge length, recorded
                                at the lane of the extracted vertex
    """
    npad = d2_ref.shape[0]
    d = x_ref.shape[2]
    inf = jnp.float32(jnp.inf)

    iota = lax.broadcasted_iota(jnp.int32, (1, npad), 1)          # (1, npad) lane ids

    # ---- one-time: squared pairwise distances (VPU, direct differences) ----
    x = x_ref[0].astype(jnp.float32)                              # (npad, d)
    xt = xt_ref[0].astype(jnp.float32)                            # (d, npad)
    d2 = jnp.zeros((npad, npad), jnp.float32)
    for k in range(d):                                            # static, d is tiny (2/3)
        diff = x[:, k:k + 1] - xt[k:k + 1, :]
        d2 = d2 + diff * diff
    rmask = lax.broadcasted_iota(jnp.int32, (npad, 1), 0) < n
    cmask = iota < n
    d2_ref[...] = jnp.where(rmask & cmask, d2, inf)               # padding -> +inf

    deaths_ref[...] = jnp.zeros((1, npad), jnp.float32)

    # ---- Prim's MST on squared distances (sqrt is monotone -> same tree) ----
    # Pack (value bits, lane index) into one int32 so min + argmin is a single
    # lane reduce. d2 >= 0 so its f32 bit pattern orders correctly as int32;
    # clearing the low `kbits` mantissa bits to hold the lane index only
    # perturbs tie-breaking, the recorded death values stay exact.
    kbits = max(1, (npad - 1).bit_length())
    low_mask = (1 << kbits) - 1

    # Vertex 0 seeds the tree; tree / padded lanes are encoded as +inf (sticky).
    mindist0 = jnp.where(iota == 0, inf, d2_ref[0:1, :])

    def body(_s, mindist):
        bits = pltpu.bitcast(mindist, jnp.int32)
        packed = (bits & ~low_mask) | iota
        pmin = jnp.min(packed)                                    # fused min/argmin
        sel = packed == pmin                                      # one-hot lane of new vertex
        # exact squared edge length of the extracted vertex, written at its lane
        pltpu.store(deaths_ref, mindist, mask=sel)
        j = pmin & low_mask                                       # scalar vertex index
        new_row = d2_ref[pl.ds(j, 1), :]                          # (1, npad) row gather, no MXU
        in_tree = mindist == inf                                  # keep tree/pad lanes at +inf
        return jnp.where(sel | in_tree, inf, jnp.minimum(mindist, new_row))

    lax.fori_loop(1, n, body, mindist0)

    deaths = jnp.sqrt(deaths_ref[...])                            # N-1 transcendentals total
    deaths = jnp.where(iota == 0, inf, deaths)                    # essential H0 class at root
    births = jnp.zeros((1, npad), jnp.float32)
    dgm_ref[0] = jnp.concatenate([births, deaths], axis=0)        # (2, npad), lane-dense


def alpha_h0_diagram(x):
    """x: (N, D) float point cloud -> (N, 2) H0 diagram (births, deaths)."""
    x = jnp.asarray(x, jnp.float32)
    n, d = x.shape
    npad = max(128, _round_up(n, 128))                            # lane-dense padding

    x_pad = jnp.zeros((1, npad, d), jnp.float32).at[0, :n, :].set(x)
    xt_pad = jnp.transpose(x_pad, (0, 2, 1))                      # (1, d, npad)

    d2_bytes = npad * npad * 4
    # TODO(synk): for d2_bytes beyond VMEM (N >~ 2800 on v7x / ~5000 on v6e), keep
    # the distance matrix in HBM (memory_space=pl.ANY) and DMA row blocks per Prim
    # step instead of a resident VMEM scratch.
    vmem_limit = int(min(96 * 2**20, d2_bytes + 16 * 2**20))

    dgm = pl.pallas_call(
        functools.partial(_alpha_h0_kernel, n=n),
        out_shape=jax.ShapeDtypeStruct((1, 2, npad), jnp.float32),
        grid=(1,),                                                # batch axis (parallel across cores if >1 clouds)
        in_specs=[
            pl.BlockSpec((1, npad, d), lambda b: (b, 0, 0)),
            pl.BlockSpec((1, d, npad), lambda b: (b, 0, 0)),
        ],
        out_specs=pl.BlockSpec((1, 2, npad), lambda b: (b, 0, 0)),
        scratch_shapes=[
            pltpu.VMEM((npad, npad), jnp.float32),                # squared-distance matrix
            pltpu.VMEM((1, npad), jnp.float32),                   # recorded deaths (d^2)
        ],
        compiler_params=pltpu.CompilerParams(
            dimension_semantics=("parallel",),
            vmem_limit_bytes=vmem_limit,
        ),
    )(x_pad, xt_pad)

    return dgm[0, :, :n].T                                        # (N, 2)


class AlphaLayer:
    """JAX/Pallas equivalent of topologylayer AlphaLayer (maxdim=0)."""

    def __init__(self, maxdim=0, verbose=False):
        # TODO(synk): maxdim > 0 requires Delaunay triangulation + boundary-matrix
        # reduction (combinatorial, data-dependent) -- no clean Pallas equivalent.
        if maxdim != 0:
            raise NotImplementedError("Only maxdim=0 is implemented in the Pallas port.")
        self.maxdim = maxdim
        self.verbose = verbose

    def __call__(self, x):
        dgm0 = alpha_h0_diagram(x)
        dgms = (dgm0,)
        return dgms, True


def _numpy_mst_deaths(x):
    """Reference Prim MST edge lengths (finite H0 deaths), for validation."""
    x = np.asarray(x, np.float64)
    n = x.shape[0]
    dist = np.sqrt(np.maximum(
        ((x[:, None, :] - x[None, :, :]) ** 2).sum(-1), 0.0))
    in_tree = np.zeros(n, bool)
    in_tree[0] = True
    mind = dist[0].copy()
    edges = []
    for _ in range(n - 1):
        masked = np.where(in_tree, np.inf, mind)
        j = int(np.argmin(masked))
        edges.append(masked[j])
        in_tree[j] = True
        mind = np.minimum(mind, dist[j])
    return np.sort(np.array(edges))


def _check(x):
    n = x.shape[0]
    layer = AlphaLayer(maxdim=0)
    (dgm0,), flag = layer(x)
    dgm0 = np.asarray(jax.block_until_ready(dgm0))
    assert dgm0.shape == (n, 2)
    assert np.all(dgm0[:, 0] == 0.0)                              # all births at 0
    finite = dgm0[np.isfinite(dgm0[:, 1]), 1]
    assert finite.shape[0] == n - 1                               # N-1 finite bars + 1 inf bar
    ref = _numpy_mst_deaths(np.asarray(x))
    np.testing.assert_allclose(np.sort(finite), ref, rtol=1e-4, atol=1e-5)
    assert flag is True


if __name__ == "__main__":
    key = jax.random.PRNGKey(0)
    k1, k2 = jax.random.split(key)

    x1 = jax.random.normal(k1, (32, 2), dtype=jnp.float32)        # point cloud, (N, D)
    _check(x1)

    x2 = jax.random.normal(k2, (17, 3), dtype=jnp.float32)        # odd N, D=3
    _check(x2)

    print("KERNEL_OK")
</pallas_src>

<mosaic_0001>
module attributes {stable_mosaic.version = 11 : i64} {
  func.func @_alpha_h0_kernel(%arg0: i32, %arg1: memref<1x128x2xf32, #tpu.memory_space<vmem>>, %arg2: memref<1x2x128xf32, #tpu.memory_space<vmem>>, %arg3: memref<1x2x128xf32, #tpu.memory_space<vmem>>, %arg4: memref<128x128xf32, #tpu.memory_space<vmem>>, %arg5: memref<1x128xf32, #tpu.memory_space<vmem>>) attributes {dimension_semantics = [#tpu.dimension_semantics<parallel>], iteration_bounds = array<i64: 1>, scalar_prefetch = 0 : i64, scratch_operands = 2 : i64, tpu.core_type = #tpu.core_type<tc>, window_params = [{transform_indices = @transform_0, window_bounds = array<i64: 1, 128, 2>}, {transform_indices = @transform_1, window_bounds = array<i64: 1, 2, 128>}, {transform_indices = @transform_2, window_bounds = array<i64: 1, 2, 128>}]} {
    %0 = tpu.iota {dimensions = array<i32: 1>} : vector<1x128xi32>
    %c0 = arith.constant 0 : index
    %c0_0 = arith.constant 0 : index
    %c0_1 = arith.constant 0 : index
    %1 = vector.load %arg1[%c0, %c0_0, %c0_1] : memref<1x128x2xf32, #tpu.memory_space<vmem>>, vector<1x128x2xf32>
    %2 = vector.shape_cast %1 : vector<1x128x2xf32> to vector<128x2xf32>
    %c0_2 = arith.constant 0 : index
    %c0_3 = arith.constant 0 : index
    %c0_4 = arith.constant 0 : index
    %3 = vector.load %arg2[%c0_2, %c0_3, %c0_4] : memref<1x2x128xf32, #tpu.memory_space<vmem>>, vector<1x2x128xf32>
    %4 = vector.shape_cast %3 : vector<1x2x128xf32> to vector<2x128xf32>
    %cst = arith.constant 0.000000e+00 : f32
    %5 = vector.broadcast %cst : f32 to vector<128x128xf32>
    %6 = vector.extract_strided_slice %2 {offsets = [0, 0], sizes = [128, 1], strides = [1, 1]} : vector<128x2xf32> to vector<128x1xf32>
    %7 = vector.extract_strided_slice %4 {offsets = [0, 0], sizes = [1, 128], strides = [1, 1]} : vector<2x128xf32> to vector<1x128xf32>
    %8 = vector.broadcast %6 : vector<128x1xf32> to vector<128x128xf32>
    %9 = vector.broadcast %7 : vector<1x128xf32> to vector<128x128xf32>
    %10 = arith.subf %8, %9 : vector<128x128xf32>
    %11 = arith.mulf %10, %10 : vector<128x128xf32>
    %12 = arith.addf %5, %11 : vector<128x128xf32>
    %13 = vector.extract_strided_slice %2 {offsets = [0, 1], sizes = [128, 1], strides = [1, 1]} : vector<128x2xf32> to vector<128x1xf32>
    %14 = vector.extract_strided_slice %4 {offsets = [1, 0], sizes = [1, 128], strides = [1, 1]} : vector<2x128xf32> to vector<1x128xf32>
    %15 = vector.broadcast %13 : vector<128x1xf32> to vector<128x128xf32>
    %16 = vector.broadcast %14 : vector<1x128xf32> to vector<128x128xf32>
    %17 = arith.subf %15, %16 : vector<128x128xf32>
    %18 = arith.mulf %17, %17 : vector<128x128xf32>
    %19 = arith.addf %12, %18 : vector<128x128xf32>
    %20 = tpu.iota {dimensions = array<i32: 0>} : vector<128x1xi32>
    %c32_i32 = arith.constant 32 : i32
    %21 = vector.broadcast %c32_i32 : i32 to vector<128x1xi32>
    %22 = arith.cmpi slt, %20, %21 : vector<128x1xi32>
    %c32_i32_5 = arith.constant 32 : i32
    %23 = vector.broadcast %c32_i32_5 : i32 to vector<1x128xi32>
    %24 = arith.cmpi slt, %0, %23 : vector<1x128xi32>
    %25 = vector.broadcast %22 : vector<128x1xi1> to vector<128x128xi1>
    %26 = vector.broadcast %24 : vector<1x128xi1> to vector<128x128xi1>
    %27 = arith.andi %25, %26 : vector<128x128xi1>
    %cst_6 = arith.constant 0x7F800000 : f32
    %28 = vector.broadcast %cst_6 : f32 to vector<128x128xf32>
    %29 = arith.select %27, %19, %28 : vector<128x128xi1>, vector<128x128xf32>
    %c0_7 = arith.constant 0 : index
    %c0_8 = arith.constant 0 : index
    %30 = vector.load %arg4[%c0_7, %c0_8] : memref<128x128xf32, #tpu.memory_space<vmem>>, vector<128x128xf32>
    tpu.vector_store %arg4[%c0_7, %c0_8], %29 {strides = array<i32>} : memref<128x128xf32, #tpu.memory_space<vmem>>, vector<128x128xf32>,
    %cst_9 = arith.constant 0.000000e+00 : f32
    %31 = vector.broadcast %cst_9 : f32 to vector<1x128xf32>
    %c0_10 = arith.constant 0 : index
    %c0_11 = arith.constant 0 : index
    %32 = vector.load %arg5[%c0_10, %c0_11] : memref<1x128xf32, #tpu.memory_space<vmem>>, vector<1x128xf32>
    tpu.vector_store %arg5[%c0_10, %c0_11], %31 {strides = array<i32>} : memref<1x128xf32, #tpu.memory_space<vmem>>, vector<1x128xf32>,
    %c0_i32 = arith.constant 0 : i32
    %33 = vector.broadcast %c0_i32 : i32 to vector<1x128xi32>
    %34 = arith.cmpi eq, %0, %33 : vector<1x128xi32>
    %c0_12 = arith.constant 0 : index
    %c0_13 = arith.constant 0 : index
    %35 = vector.load %arg4[%c0_12, %c0_13] : memref<128x128xf32, #tpu.memory_space<vmem>>, vector<1x128xf32>
    %cst_14 = arith.constant 0x7F800000 : f32
    %36 = vector.broadcast %cst_14 : f32 to vector<1x128xf32>
    %37 = arith.select %34, %36, %35 : vector<1x128xi1>, vector<1x128xf32>
    %cst_15 = arith.constant 0x7F800000 : f32
    %c0_i32_16 = arith.constant 0 : i32
    %c31_i32 = arith.constant 31 : i32
    %38 = arith.addi %c0_i32_16, %c31_i32 : i32
    %c1_i32 = arith.constant 1 : i32
    %39 = scf.for %arg6 = %c0_i32_16 to %38 step %c1_i32 iter_args(%arg7 = %37) -> (vector<1x128xf32>)  : i32 {
      %51 = tpu.bitcast %arg7 : vector<1x128xf32> -> vector<1x128xi32>
      %c-128_i32 = arith.constant -128 : i32
      %52 = vector.broadcast %c-128_i32 : i32 to vector<1x128xi32>
      %53 = arith.andi %51, %52 : vector<1x128xi32>
      %54 = arith.ori %53, %0 : vector<1x128xi32>
      %55 = vector.shape_cast %54 : vector<1x128xi32> to vector<1x1x128xi32>
      %cst_25 = arith.constant dense<2147483647> : vector<1xi32>
      %56 = vector.multi_reduction <minsi>, %55, %cst_25 [1, 2] : vector<1x1x128xi32> to vector<1xi32>
      %57 = vector.shape_cast %56 : vector<1xi32> to vector<1x1x1xi32>
      %58 = vector.extract %57[0, 0, 0] : i32 from vector<1x1x1xi32>
      %59 = vector.broadcast %58 : i32 to vector<1x128xi32>
      %60 = arith.cmpi eq, %54, %59 : vector<1x128xi32>
      %c0_26 = arith.constant 0 : index
      %c0_27 = arith.constant 0 : index
      %61 = vector.load %arg5[%c0_26, %c0_27] : memref<1x128xf32, #tpu.memory_space<vmem>>, vector<1x128xf32>
      tpu.vector_store %arg5[%c0_26, %c0_27], %arg7 masked %60 {strides = array<i32>} : memref<1x128xf32, #tpu.memory_space<vmem>>, vector<1x128xf32>, vector<1x128xi1>
      %c127_i32 = arith.constant 127 : i32
      %62 = arith.andi %58, %c127_i32 : i32
      %63 = arith.index_cast %62 : i32 to index
      %c0_28 = arith.constant 0 : index
      %64 = vector.load %arg4[%63, %c0_28] : memref<128x128xf32, #tpu.memory_space<vmem>>, vector<1x128xf32>
      %65 = vector.broadcast %cst_15 : f32 to vector<1x128xf32>
      %66 = arith.cmpf oeq, %arg7, %65 : vector<1x128xf32>
      %67 = arith.ori %60, %66 : vector<1x128xi1>
      %68 = arith.minimumf %arg7, %64 : vector<1x128xf32>
      %69 = vector.broadcast %cst_15 : f32 to vector<1x128xf32>
      %70 = arith.select %67, %69, %68 : vector<1x128xi1>, vector<1x128xf32>
      scf.yield %70 : vector<1x128xf32>
    }
    %c0_17 = arith.constant 0 : index
    %c0_18 = arith.constant 0 : index
    %40 = vector.load %arg5[%c0_17, %c0_18] : memref<1x128xf32, #tpu.memory_space<vmem>>, vector<1x128xf32>
    %41 = math.sqrt %40 : vector<1x128xf32>
    %c0_i32_19 = arith.constant 0 : i32
    %42 = vector.broadcast %c0_i32_19 : i32 to vector<1x128xi32>
    %43 = arith.cmpi eq, %0, %42 : vector<1x128xi32>
    %cst_20 = arith.constant 0x7F800000 : f32
    %44 = vector.broadcast %cst_20 : f32 to vector<1x128xf32>
    %45 = arith.select %43, %44, %41 : vector<1x128xi1>, vector<1x128xf32>
    %cst_21 = arith.constant 0.000000e+00 : f32
    %46 = vector.broadcast %cst_21 : f32 to vector<1x128xf32>
    %47 = tpu.concatenate %46, %45 in 0 : vector<1x128xf32>, vector<1x128xf32> -> vector<2x128xf32>
    %c0_22 = arith.constant 0 : index
    %c0_23 = arith.constant 0 : index
    %c0_24 = arith.constant 0 : index
    %48 = vector.load %arg3[%c0_22, %c0_23, %c0_24] : memref<1x2x128xf32, #tpu.memory_space<vmem>>, vector<1x2x128xf32>
    %49 = vector.shape_cast %48 : vector<1x2x128xf32> to vector<2x128xf32>
    %50 = vector.shape_cast %47 : vector<2x128xf32> to vector<1x2x128xf32>
    tpu.vector_store %arg3[%c0_22, %c0_23, %c0_24], %50 {strides = array<i32>} : memref<1x2x128xf32, #tpu.memory_space<vmem>>, vector<1x2x128xf32>,
    return
  }
  func.func @transform_0(%arg0: i32) -> (i32, i32, i32) {
    %c0_i32 = arith.constant 0 : i32
    %c0_i32_0 = arith.constant 0 : i32
    %c0_i32_1 = arith.constant 0 : i32
    return %arg0, %c0_i32, %c0_i32_0 : i32, i32, i32
  }
  func.func @transform_1(%arg0: i32) -> (i32, i32, i32) {
    %c0_i32 = arith.constant 0 : i32
    %c0_i32_0 = arith.constant 0 : i32
    %c0_i32_1 = arith.constant 0 : i32
    return %arg0, %c0_i32, %c0_i32_0 : i32, i32, i32
  }
  func.func @transform_2(%arg0: i32) -> (i32, i32, i32) {
    %c0_i32 = arith.constant 0 : i32
    %c0_i32_0 = arith.constant 0 : i32
    %c0_i32_1 = arith.constant 0 : i32
    return %arg0, %c0_i32, %c0_i32_0 : i32, i32, i32
  }
}

</mosaic_0001>

<bundles_post_ra>
// kernel: tpu_custom_call.1
= control target key start
LH: loop header
LB: loop body
LE: loop exit
PB: predicated region body
PF: predicated region fallthrough
CT: control target
= control target key end

     0   :  { %v552_v2 = vmov 0   ;;  %s626_s0 = inlined_call_operand.vmem [shape: f32[1,128,2], index: 0, kind: input, shape index: {}]   ;;  %s627_s1 = inlined_call_operand.vmem [shape: f32[1,2,128], index: 1, kind: input, shape index: {}]   ;;  %s628_s2 = inlined_call_operand.hbm [shape: f32[1,2,128], index: 2, kind: output, shape index: {}]  }
   0x1   :  { %v15_v0 = vld [vmem:[%s626_s0 + $0x8] sm:$0xff]  ;;  %v14_v1 = vld [vmem:[%s626_s0] sm:$0xff]  ;;  %508 = vset.pattern.permute.xlu1 %v552_v2  ;;  %506 = vset.pattern.permute.xlu0 %v552_v2 }
   0x2   :  { %7 = vsyncpa [#allocation5], 0  ;;  %38 = vperm.xlu1 %508, %v15_v0   ;;  %33 = vperm.xlu0 %506, %v14_v1   ;;  %v16_v3 = vld [vmem:[%s626_s0 + $0x10] sm:$0xff]  ;;  %v553_v4 = vmov 1   ;;  %v17_v5 = vld [vmem:[%s626_s0 + $0x18] sm:$0xff]  ;;  %v554_v6 = vmov inf   ;;  %v12_v8 = vlaneseq }
   0x3   :  { %383 = vst [vmem:[#allocation2 + $0x20] sm:$0xff] %v554_v6  ;;  %384 = vst [vmem:[#allocation2 + $0x28] sm:$0xff] %v554_v6  ;;  %v555_v7 = vmov 0.0   ;;  %v30_v11 = vld [vmem:[%s627_s1] sm:$0x3]  ;;  %s601_s1 = smov 0  }
   0x4   :  { %385 = vst [vmem:[#allocation2 + $0x30] sm:$0xff] %v554_v6  ;;  %386 = vst [vmem:[#allocation2 + $0x38] sm:$0xff] %v554_v6  ;;  %v112_v9 = vshrl.u32 %v12_v8, 7  ;;  %v587_v20 = vand.u32 127, %v12_v8 }
   0x5   :  { %387 = vst [vmem:[#allocation2 + $0x40] sm:$0xff] %v554_v6  ;;  %388 = vst [vmem:[#allocation2 + $0x48] sm:$0xff] %v554_v6 }
   0x6   :  { %43 = vperm.xlu1 %508, %v16_v3   ;;  %507 = vset.pattern.permute.xlu0 %v553_v4  ;;  %389 = vst [vmem:[#allocation2 + $0x50] sm:$0xff] %v554_v6  ;;  %390 = vst [vmem:[#allocation2 + $0x58] sm:$0xff] %v554_v6  ;;  %v113_v10 = vsub.s32 0, %v112_v9  ;;  %v229_v12 = vsub.s32 1, %v112_v9  ;;  %vm312_vm0 = vcmp.lt.s32.totalorder %v587_v20, 32  ;;  %vm396_vm1 = vcmp.eq.s32.totalorder %v587_v20, 0 }
   0x7   :  { %164 = vperm.xlu0 %507, %v14_v1   ;;  %391 = vst [vmem:[#allocation2 + $0x60] sm:$0xff] %v554_v6  ;;  %392 = vst [vmem:[#allocation2 + $0x68] sm:$0xff] %v554_v6 }
   0x8   :  { %393 = vst [vmem:[#allocation2 + $0x70] sm:$0xff] %v554_v6  ;;  %394 = vst [vmem:[#allocation2 + $0x78] sm:$0xff] %v554_v6  ;;  %v114_v14 = vrot.slane %v30_v11, %v113_v10  ;;  %v230_v16 = vrot.slane %v30_v11, %v229_v12 }
   0x9   :  { %395 = vst [vmem:[#allocation3] sm:$0x1] %v555_v7 }
   0xa   :  { %48 = vperm.xlu1 %508, %v17_v5  }
   0xb   :  { %168 = vperm.xlu0 %507, %v15_v0  }
   0xe   :  { %509 = vset.pattern.permute.xlu1 %v553_v4 }
   0xf   :  { %172 = vperm.xlu1 %509, %v16_v3   ;;  %176 = vperm.xlu0 %507, %v17_v5  }
  0x81   :  { %v39_v13 = vpop.permute.xlu1 %38  ;;  %v34_v15 = vpop.permute.xlu0 %33 }
  0x82   :  { %v115_v17 = vsub.f32 %v34_v15, %v114_v14  ;;  %v116_v22 = vsub.f32 %v39_v13, %v114_v14 }
  0x84   :  { %v131_v23 = vmul.f32 %v115_v17, %v115_v17  ;;  %v132_v30 = vmul.f32 %v116_v22, %v116_v22 }
  0x85   :  { %v44_v18 = vpop.permute.xlu1 %43 }
  0x86   :  { %v165_v19 = vpop.permute.xlu0 %164  ;;  %v117_v29 = vsub.f32 %v44_v18, %v114_v14 }
  0x87   :  { %v231_v21 = vsub.f32 %v165_v19, %v230_v16 }
  0x88   :  { %v133_v39 = vmul.f32 %v117_v29, %v117_v29 }
  0x89   :  { %v247_v24 = vmul.f32 %v231_v21, %v231_v21  ;;  %v49_v25 = vpop.permute.xlu1 %48 }
  0x8a   :  { %v169_v26 = vpop.permute.xlu0 %168  ;;  %v118_v32 = vsub.f32 %v49_v25, %v114_v14 }
  0x8b   :  { %v263_v27 = vadd.f32 %v247_v24, %v131_v23  ;;  %v232_v28 = vsub.f32 %v169_v26, %v230_v16 }
  0x8c   :  { %v134_v40 = vmul.f32 %v118_v32, %v118_v32 }
  0x8d   :  { %v363_v31 = vsel %vm312_vm0, %v263_v27, inf  ;;  %v248_v33 = vmul.f32 %v232_v28, %v232_v28 }
  0x8e   :  { %379 = vst [vmem:[#allocation2] sm:$0xff] %v363_v31  ;;  %v173_v34 = vpop.permute.xlu1 %172  ;;  %v177_v35 = vpop.permute.xlu0 %176 }
  0x8f   :  { %v264_v36 = vadd.f32 %v248_v33, %v132_v30  ;;  %v233_v37 = vsub.f32 %v173_v34, %v230_v16  ;;  %v234_v38 = vsub.f32 %v177_v35, %v230_v16 }
  0x91   :  { %v364_v41 = vsel %vm312_vm0, %v264_v36, inf  ;;  %v249_v42 = vmul.f32 %v233_v37, %v233_v37  ;;  %v250_v43 = vmul.f32 %v234_v38, %v234_v38 }
  0x92   :  { %380 = vst [vmem:[#allocation2 + $0x8] sm:$0xff] %v364_v41 }
  0x93   :  { %v265_v44 = vadd.f32 %v249_v42, %v133_v39  ;;  %v266_v45 = vadd.f32 %v250_v43, %v134_v40 }
  0x95   :  { %v397_v46 = vld [vmem:[#allocation2] sm:$0x1]  ;;  %v365_v47 = vsel %vm312_vm0, %v265_v44, inf  ;;  %v366_v48 = vsel %vm312_vm0, %v266_v45, inf }
  0x96   :  { %v398_v49 = vsel %vm396_vm1, inf, %v397_v46   ;;  %381 = vst [vmem:[#allocation2 + $0x10] sm:$0xff] %v365_v47  ;;  %382 = vst [vmem:[#allocation2 + $0x18] sm:$0xff] %v366_v48 }
  0x97   :  { %v544_v50 = vmov %v398_v49  }
  0x98 LB: > { %v407_v51 = vand.u32 4294967168, %v546_v50  ;;  %vm409_vm2 = vcmask 1040384   ;;  %vm441_vm8 = vcmp.eq.f32.partialorder %v546_v50, inf  ;;  %s404_s1 = sadd.s32 1, %s550_s1   ;;  %s550_s1 = sphi %s601_s1, %s404_s1   ;;  %v546_v50 = vphi %v544_v50, %v444_v50  }
  0x99   : > { %p401_p0 = scmp.ge.s32.totalorder %s404_s1, 31  }
  0x9a   : > { %v408_v52 = vor.u32 %v407_v51, %v587_v20  ;;  %s556_s21 = smov (%p401_p0), [#allocation4]  }
  0x9b   :  { %s466_s22 = sshll.u32 (%p401_p0), %s556_s21, 4  ;;  %s467_s22 = int_to_ptr.vmem [resolvable:$true] %s466_s22 }
  0x9c   : > { %v410_v53 = vsel %vm409_vm2, %v408_v52, 2147483647  ;;  %s512_s23 = scalar_lea.vmem (%p401_p0), %s467_s22, 32  ;;  %p517_p2 = scmp.lt.s32.totalorder (%p401_p0), %s467_s22, %s467_s22 }
  0x9d   : > { %v412_v54 = vshra.s32 %v410_v53, 16  ;;  %v411_v56 = vand.u32 65535, %v410_v53  ;;  %p513_p1 = scmp.ne.s32.totalorder (%p401_p0), %s467_s22, %s512_s23  ;;  %p518_p3 = scmp.lt.s32.totalorder (%p401_p0), %s512_s23, %s512_s23 }
  0x9f   : > { %v414_v55 = vcvt.s32.f32 %v412_v54  ;;  %v413_v57 = vcvt.s32.f32 %v411_v56  ;;  %p519_p4 = por (%p401_p0), %p518_p3, %p517_p2 }
  0xa1   : > { %415 = vmin.xlane.f32.xlu0 %v414_v55  ;;  %p520_p5 = pnand (%p401_p0), %p519_p4, %p513_p1 }
 0x12e   : > { %v416_v58 = vpop.xlane.xlu0 %415 }
 0x12f   : > { %vm417_vm3 = vcmp.eq.f32.partialorder %v414_v55, %v416_v58  ;;  %v422_v60 = vcvt.f32.s32 %v416_v58 }
 0x130   : > { %v418_v59 = vsel %vm417_vm3, %v413_v57, inf }
 0x131   : > { %419 = vmin.xlane.f32.xlu0 %v418_v59  ;;  %v423_v62 = vshll.u32 %v422_v60, 16 }
 0x1be   : > { %v420_v61 = vpop.xlane.xlu0 %419 }
 0x1bf   : > { %v421_v63 = vcvt.f32.s32 %v420_v61 }
 0x1c1   : > { %v424_v0 = vadd.s32 %v423_v62, %v421_v63 }
 0x1c3   : > { %v425_v1 = vrot.slane %v424_v0, 4 }
 0x1c5   : > { %vm426_vm4 = vcmp.lt.s32.totalorder %v424_v0, %v425_v1 }
 0x1c6   : > { %v427_v2 = vsel %vm426_vm4, %v424_v0, %v425_v1 }
 0x1c7   : > { %v428_v3 = vrot.slane %v427_v2, 2 }
 0x1c9   : > { %vm429_vm5 = vcmp.lt.s32.totalorder %v427_v2, %v428_v3 }
 0x1ca   : > { %v430_v4 = vsel %vm429_vm5, %v427_v2, %v428_v3 }
 0x1cb   : > { %v431_v5 = vrot.slane %v430_v4, 1 }
 0x1cd   : > { %vm432_vm6 = vcmp.lt.s32.totalorder %v430_v4, %v431_v5 }
 0x1ce   : > { %v433_v6 = vsel %vm432_vm6, %v430_v4, %v431_v5 }
 0x1cf   : > { %483 = vpush %v433_v6 }
 0x200   : > { %s484_s18 = spop %483  ;;  %403 = sbr.rel (!%p401_p0) target bundleno = 152 (0x98), region = 36 }
 0x201   : > { %v435_v7 = vstv %s484_s18  ;;  %s438_s19 = sand.u32 127, %s484_s18 }
 0x202   : > { %vm436_vm7 = vcmp.eq.s32.totalorder %v408_v52, %v435_v7  ;;  %s439_s20 = scalar_lea.vmem [#allocation2], %s438_s19 }
 0x203   : > { %437 = vst.msk [vmem:[#allocation3] sm:$0x1] %vm436_vm7, %v546_v50  ;;  %v440_v8 = vld [vmem:[%s439_s20] sm:$0x1]  ;;  %vm442_vm9 = vmor %vm436_vm7, %vm441_vm8 }
 0x204   : > { %v443_v9 = vmin.f32 %v546_v50, %v440_v8 }
 0x206   : > { %v444_v50 = vsel %vm442_vm9, inf, %v443_v9  }
 0x20a   :  { %v445_v10 = vld [vmem:[#allocation3] sm:$0x1] }
 0x20b   :  { %510 = vrsqrt.f32 %v445_v10  ;;  %vm448_vm10 = vcmp.eq.f32.partialorder %v445_v10, inf  ;;  %v451_v12 = vand.u32 2147483648, %v445_v10  ;;  %vm450_vm11 = vcmp.eq.f32.partialorder %v445_v10, 0.0 }
 0x215   :  { %v511_v11 = vpop.eup %510 }
 0x216   :  { %v447_v13 = vmul.f32 %v511_v11, %v445_v10 }
 0x218   :  { %v449_v14 = vsel %vm448_vm10, %v445_v10, %v447_v13 }
 0x219   :  { %v452_v15 = vsel %vm450_vm11, %v451_v12, %v449_v14 }
 0x21a   :  { %v453_v16 = vsel %vm396_vm1, inf, %v452_v15 }
 0x21b   :  { %v455_v17 = vrot.slane %v453_v16, 7 }
 0x21d   :  { %v458_v18 = vsel %vm409_vm2, 0.0, %v455_v17 }
 0x21e   :  { %459 = vst [vmem:[#allocation4] sm:$0x3] %v458_v18 }
 0x21f   :  { %523 = shalt.err (!%p520_p5)
}
 0x220   :  { %s524_s26 = scalar_lea.hbm %s628_s2, 32 }
 0x221   :  { %p525_p6 = scmp.ne.s32.totalorder %s628_s2, %s524_s26  ;;  %p528_p7 = scmp.lt.u32.totalorder %s524_s26, %s628_s2 }
 0x223   :  { %p530_p8 = pnand %p528_p7, %p525_p6 }
 0x225   :  { %533 = shalt.err (!%p530_p8)
}
 0x226   :  { %469 = dma.vmem_to_hbm [thread:$0]  %s467_s22, 32, %s628_s2, [#allocation5]  }
 0x227   :  { %542 = dma.done.wait [#allocation5], 32  }
 0x228   :  { %543 = vsyncadd [#allocation5], 4294967264 }
 0x229   :  { %473 = vsyncpa [#allocation5], 1 }

</bundles_post_ra>
